<compile_context>
chip_gen: v5e
topology: v5e:2x2
jax: 0.10.0
libtpu: 0.0.40
codegen_flags: <defaults>
</compile_context>

<pallas_src>
import functools

import jax
import jax.numpy as jnp
from jax.experimental import pallas as pl
from jax.experimental.pallas import tpu as pltpu


def _round_up(v, m):
    return ((v + m - 1) // m) * m


def _vmem_capacity_bytes():
    try:
        cap = getattr(pltpu.get_tpu_info(), "vmem_capacity_bytes", None)
        if cap:
            return int(cap)
    except Exception:
        pass
    return 64 * 1024 * 1024  # conservative fallback (v7x per-TC VMEM)


def _pooling_classifier_kernel(x_ref, w_ref, b_ref, o_ref, acc_ref, *,
                               pooling_type, n_total, needs_mask):
    # x_ref: (tb, tn, D) input-dtype chunk of instances for tb bags
    # w_ref: (D, C)   shared linear weight
    # b_ref: (1, C)   shared bias (f32)
    # o_ref: (tb, C)  pooled logits for these bags (written on last chunk only)
    # acc_ref: (tb, C) f32 running max (max) / running logits-sum (mean)
    j = pl.program_id(1)
    tb, tn, d = x_ref.shape
    c = w_ref.shape[1]

    @pl.when(j == 0)
    def _init():
        if pooling_type == "max":
            acc_ref[...] = jnp.full(acc_ref.shape, -jnp.inf, acc_ref.dtype)
        else:
            acc_ref[...] = jnp.zeros(acc_ref.shape, acc_ref.dtype)

    w = w_ref[...].astype(jnp.bfloat16)  # tiny (D, C); cast in-kernel

    if pooling_type == "max":
        # One (tb*tn, D) @ (D, C) MXU matmul per chunk; f32 logits are bounded
        # by the chunk size instead of the whole bag.
        x2d = x_ref[...].reshape(tb * tn, d).astype(jnp.bfloat16)
        logits = jnp.dot(x2d, w, preferred_element_type=jnp.float32)
        logits = logits.reshape(tb, tn, c)
        if needs_mask:  # partial last instance chunk
            n_idx = jax.lax.broadcasted_iota(jnp.int32, (1, tn, 1), 1) + j * tn
            logits = jnp.where(n_idx < n_total, logits, -jnp.inf)
        acc_ref[...] = jnp.maximum(acc_ref[...], jnp.max(logits, axis=1))
    else:  # mean: pool (sum) before the matmul; mean_n(xW) == (sum_n(x)/N) W
        x = x_ref[...]
        if needs_mask:
            n_idx = jax.lax.broadcasted_iota(jnp.int32, (1, tn, 1), 1) + j * tn
            x = jnp.where(n_idx < n_total, x, jnp.zeros((), x.dtype))
        chunk_sum = jnp.sum(x, axis=1, dtype=jnp.float32)            # (tb, D)
        acc_ref[...] += jnp.dot(chunk_sum.astype(jnp.bfloat16), w,
                                preferred_element_type=jnp.float32)  # (tb, C)

    @pl.when(j == pl.num_programs(1) - 1)
    def _finalize():
        pooled = acc_ref[...]
        if pooling_type == "mean":
            pooled = pooled * (1.0 / n_total)
        # Bias is constant over N -> adding after pooling is exact for max & mean.
        o_ref[...] = (pooled + b_ref[...]).astype(o_ref.dtype)


def pooling_classifier(x, w, b, pooling_type="max", *,
                       bag_block=None, instance_block=None):
    """Pallas implementation of PoolingClassifier.forward.

    Args:
      x: (B, N, D) feature bags batch (streamed in its own dtype, no wrapper cast).
      w: (D, C) instance-classifier linear weight.
      b: (1, C) or (C,) instance-classifier bias.
      pooling_type: 'max' or 'mean'.
      bag_block / instance_block: optional tile-size overrides (testing / tuning).
    Returns:
      (B, C) pooled logits, or (B,) when C == 1 (torch .squeeze(1) semantics).
    """
    if pooling_type not in ("max", "mean"):
        raise ValueError("Pooling type must be 'max' or 'mean'")
    B, N, D = x.shape
    Dw, C = w.shape
    assert Dw == D, "weight must have shape (D, C)"
    bias = jnp.reshape(b, (1, C)).astype(jnp.float32)  # tiny

    x_isz = jnp.dtype(x.dtype).itemsize
    w_isz = jnp.dtype(w.dtype).itemsize
    sub_x = 8 * max(1, 4 // x_isz)   # sublane pack: f32 -> 8, bf16 -> 16, int8 -> 32
    d_pad = _round_up(D, 128)
    c_pad = _round_up(C, 128)

    # Generation-aware VMEM budget (v7x: 64 MiB/TC -> ~48 MiB limit; v5e/v6e: 128 -> ~96).
    vmem_limit = min((_vmem_capacity_bytes() * 3) // 4, 100 * 1024 * 1024)
    budget = (vmem_limit * 7) // 10

    w_sub = 8 * max(1, 4 // w_isz)
    fixed = (2 * _round_up(D, w_sub) * c_pad * w_isz   # weight, double-buffered
             + _round_up(D, 16) * c_pad * 2            # in-kernel bf16 copy of w
             + 2 * 8 * c_pad * 4                       # bias block, double-buffered
             + (1 << 20))                              # misc slack
    avail = max(budget - fixed, 1 << 20)

    def per_bag_cost(tn_):
        # Layout-padded VMEM bytes per bag per chunk, incl. in-kernel intermediates.
        n_x = _round_up(tn_, sub_x)
        cost = 2 * n_x * d_pad * x_isz                 # streamed x chunk, double-buffered
        if pooling_type == "max":
            cost += _round_up(tn_, 16) * d_pad * 2     # bf16 copy of the chunk
            cost += 2 * _round_up(tn_, 8) * c_pad * 4  # f32 logits (+ relayout slack)
        else:
            cost += n_x * d_pad * 4                    # masked f32 temp of the chunk
        cost += 3 * c_pad * 4                          # out (x2 buffers) + acc scratch rows
        return cost

    # Instances per chunk: whole bag unless even a few bags would not fit VMEM.
    if instance_block is not None:
        tn = max(1, min(int(instance_block), N))
    else:
        tn = N
        min_bags = 8 if B >= 8 else B
        while tn > 8 and min_bags * per_bag_cost(tn) > avail:
            tn = max(8, ((tn // 2) // 8) * 8)          # keep chunks 8-aligned (free reshape)

    # Bags per block: as many as fit VMEM, multiple of 8 (or the whole batch).
    if bag_block is not None:
        tb = max(1, min(int(bag_block), B))
    else:
        tb = max(1, avail // per_bag_cost(tn))
        if tb >= B or B <= 8:
            tb = B
        else:
            tb = max(8, (tb // 8) * 8)

    needs_mask = (N % tn) != 0
    grid = (pl.cdiv(B, tb), pl.cdiv(N, tn))

    kernel = functools.partial(_pooling_classifier_kernel,
                               pooling_type=pooling_type,
                               n_total=N,
                               needs_mask=needs_mask)

    out = pl.pallas_call(
        kernel,
        out_shape=jax.ShapeDtypeStruct((B, C), jnp.float32),
        grid_spec=pltpu.PrefetchScalarGridSpec(
            num_scalar_prefetch=0,
            grid=grid,
            in_specs=[
                pl.BlockSpec((tb, tn, D), lambda i, j: (i, j, 0)),  # x chunk
                pl.BlockSpec((D, C), lambda i, j: (0, 0)),          # shared weight
                pl.BlockSpec((1, C), lambda i, j: (0, 0)),          # shared bias
            ],
            out_specs=pl.BlockSpec((tb, C), lambda i, j: (i, 0)),   # lane-dense output
            scratch_shapes=[pltpu.VMEM((tb, C), jnp.float32)],      # running max / sum
        ),
        compiler_params=pltpu.CompilerParams(
            dimension_semantics=("parallel", "arbitrary"),  # bag blocks shard over TCs
            vmem_limit_bytes=int(vmem_limit),
        ),
    )(x, w, bias)

    if C == 1:
        out = out[:, 0]  # torch .squeeze(1): only squeezes when dim 1 has size 1
    return out


def pooling_classifier_ref(x, w, b, pooling_type="max"):
    """Pure-JAX f32 reference mirroring the PyTorch loop semantics."""
    logits = (jnp.einsum("bnd,dc->bnc", x.astype(jnp.float32), w.astype(jnp.float32))
              + b.astype(jnp.float32).reshape(1, 1, -1))
    if pooling_type == "max":
        out = jnp.max(logits, axis=1)
    elif pooling_type == "mean":
        out = jnp.mean(logits, axis=1)
    else:
        raise ValueError("Pooling type must be 'max' or 'mean'")
    if out.shape[1] == 1:
        out = out[:, 0]
    return out


if __name__ == "__main__":
    key = jax.random.PRNGKey(0)
    B, N, D, C = 2, 16, 32, 8  # bags, instances/bag, feature dim, classes

    kx, kw, kb = jax.random.split(key, 3)
    x = jax.random.normal(kx, (B, N, D), dtype=jnp.float32)
    w = jax.random.normal(kw, (D, C), dtype=jnp.float32) * 0.1   # Linear(D, C) weight^T
    b = jax.random.normal(kb, (1, C), dtype=jnp.float32) * 0.1   # Linear(D, C) bias

    out_max = jax.block_until_ready(pooling_classifier(x, w, b, "max"))
    out_mean = jax.block_until_ready(pooling_classifier(x, w, b, "mean"))
    ref_max = pooling_classifier_ref(x, w, b, "max")
    ref_mean = pooling_classifier_ref(x, w, b, "mean")

    assert out_max.shape == (B, C)
    assert out_mean.shape == (B, C)
    # bf16 matmul operands (f32 accumulation) vs pure-f32 reference.
    assert jnp.allclose(out_max, ref_max, atol=2e-2, rtol=2e-2)
    assert jnp.allclose(out_mean, ref_mean, atol=2e-2, rtol=2e-2)

    # C == 1 squeeze path (torch .squeeze(1) semantics).
    out_c1 = jax.block_until_ready(pooling_classifier(x, w[:, :1], b[:, :1], "max"))
    ref_c1 = pooling_classifier_ref(x, w[:, :1], b[:, :1], "max")
    assert out_c1.shape == (B,)
    assert jnp.allclose(out_c1, ref_c1, atol=2e-2, rtol=2e-2)

    # Exercise multi-block bag axis, instance chunking, and the partial-chunk
    # mask path (B % tb != 0, N % tn != 0) with forced small tiles.
    B2, N2 = 12, 20
    x2 = jax.random.normal(jax.random.PRNGKey(1), (B2, N2, D), dtype=jnp.float32)
    for pt in ("max", "mean"):
        out2 = jax.block_until_ready(
            pooling_classifier(x2, w, b, pt, bag_block=8, instance_block=8))
        ref2 = pooling_classifier_ref(x2, w, b, pt)
        assert out2.shape == (B2, C)
        assert jnp.allclose(out2, ref2, atol=2e-2, rtol=2e-2)

    print("KERNEL_OK")
</pallas_src>

<mosaic_0001>
module attributes {stable_mosaic.version = 11 : i64} {
  func.func @_pooling_classifier_kernel(%arg0: i32, %arg1: i32, %arg2: memref<2x16x32xf32, #tpu.memory_space<vmem>>, %arg3: memref<32x8xf32, #tpu.memory_space<vmem>>, %arg4: memref<1x8xf32, #tpu.memory_space<vmem>>, %arg5: memref<2x8xf32, #tpu.memory_space<vmem>>, %arg6: memref<2x8xf32, #tpu.memory_space<vmem>>) attributes {dimension_semantics = [#tpu.dimension_semantics<parallel>, #tpu.dimension_semantics<arbitrary>], iteration_bounds = array<i64: 1, 1>, scalar_prefetch = 0 : i64, scratch_operands = 1 : i64, tpu.core_type = #tpu.core_type<tc>, window_params = [{transform_indices = @transform_0, window_bounds = array<i64: 2, 16, 32>}, {pipeline_mode = #tpu.pipeline_mode<synchronous>, transform_indices = @transform_1, window_bounds = array<i64: 32, 8>}, {pipeline_mode = #tpu.pipeline_mode<synchronous>, transform_indices = @transform_2, window_bounds = array<i64: 1, 8>}, {transform_indices = @transform_3, window_bounds = array<i64: 2, 8>}]} {
    %c0_i32 = arith.constant 0 : i32
    %0 = arith.cmpi eq, %arg1, %c0_i32 : i32
    %1 = arith.extui %0 : i1 to i32
    %c0_i32_0 = arith.constant 0 : i32
    %2 = arith.cmpi ne, %1, %c0_i32_0 : i32
    scf.if %2 {
      %cst_12 = arith.constant 0xFF800000 : f32
      %17 = vector.broadcast %cst_12 : f32 to vector<2x8xf32>
      %c0_13 = arith.constant 0 : index
      %c0_14 = arith.constant 0 : index
      %18 = vector.load %arg6[%c0_13, %c0_14] : memref<2x8xf32, #tpu.memory_space<vmem>>, vector<2x8xf32>
      tpu.vector_store %arg6[%c0_13, %c0_14], %17 {strides = array<i32>} : memref<2x8xf32, #tpu.memory_space<vmem>>, vector<2x8xf32>,
    } else {
    }
    %c0 = arith.constant 0 : index
    %c0_1 = arith.constant 0 : index
    %3 = vector.load %arg3[%c0, %c0_1] : memref<32x8xf32, #tpu.memory_space<vmem>>, vector<32x8xf32>
    %4 = arith.truncf %3 : vector<32x8xf32> to vector<32x8xbf16>
    %c0_2 = arith.constant 0 : index
    %c0_3 = arith.constant 0 : index
    %c0_4 = arith.constant 0 : index
    %5 = vector.load %arg2[%c0_2, %c0_3, %c0_4] : memref<2x16x32xf32, #tpu.memory_space<vmem>>, vector<2x16x32xf32>
    %6 = vector.shape_cast %5 : vector<2x16x32xf32> to vector<32x32xf32>
    %7 = arith.truncf %6 : vector<32x32xf32> to vector<32x32xbf16>
    %cst = arith.constant dense<0.000000e+00> : vector<32x8xf32>
    %8 = tpu.matmul %7, %4, %cst {dimension_numbers = #tpu.dot_dimension_numbers<[1], [0], [0], [1], [0, 0, 1, 1], [], []>} : vector<32x32xbf16>, vector<32x8xbf16>, vector<32x8xf32> -> vector<32x8xf32>
    %9 = vector.shape_cast %8 : vector<32x8xf32> to vector<2x16x8xf32>
    %c0_5 = arith.constant 0 : index
    %c0_6 = arith.constant 0 : index
    %10 = vector.load %arg6[%c0_5, %c0_6] : memref<2x8xf32, #tpu.memory_space<vmem>>, vector<2x8xf32>
    %cst_7 = arith.constant dense<0xFF800000> : vector<2x8xf32>
    %11 = vector.multi_reduction <maximumf>, %9, %cst_7 [1] : vector<2x16x8xf32> to vector<2x8xf32>
    %12 = arith.maximumf %10, %11 : vector<2x8xf32>
    %c0_8 = arith.constant 0 : index
    %c0_9 = arith.constant 0 : index
    %13 = vector.load %arg6[%c0_8, %c0_9] : memref<2x8xf32, #tpu.memory_space<vmem>>, vector<2x8xf32>
    tpu.vector_store %arg6[%c0_8, %c0_9], %12 {strides = array<i32>} : memref<2x8xf32, #tpu.memory_space<vmem>>, vector<2x8xf32>,
    %c0_i32_10 = arith.constant 0 : i32
    %14 = arith.cmpi eq, %arg1, %c0_i32_10 : i32
    %15 = arith.extui %14 : i1 to i32
    %c0_i32_11 = arith.constant 0 : i32
    %16 = arith.cmpi ne, %15, %c0_i32_11 : i32
    scf.if %16 {
      %c0_12 = arith.constant 0 : index
      %c0_13 = arith.constant 0 : index
      %17 = vector.load %arg6[%c0_12, %c0_13] : memref<2x8xf32, #tpu.memory_space<vmem>>, vector<2x8xf32>
      %c0_14 = arith.constant 0 : index
      %c0_15 = arith.constant 0 : index
      %18 = vector.load %arg4[%c0_14, %c0_15] : memref<1x8xf32, #tpu.memory_space<vmem>>, vector<1x8xf32>
      %19 = vector.broadcast %18 : vector<1x8xf32> to vector<2x8xf32>
      %20 = arith.addf %17, %19 : vector<2x8xf32>
      %c0_16 = arith.constant 0 : index
      %c0_17 = arith.constant 0 : index
      %21 = vector.load %arg5[%c0_16, %c0_17] : memref<2x8xf32, #tpu.memory_space<vmem>>, vector<2x8xf32>
      tpu.vector_store %arg5[%c0_16, %c0_17], %20 {strides = array<i32>} : memref<2x8xf32, #tpu.memory_space<vmem>>, vector<2x8xf32>,
    } else {
    }
    return
  }
  func.func @transform_0(%arg0: i32, %arg1: i32) -> (i32, i32, i32) {
    %c0_i32 = arith.constant 0 : i32
    %c0_i32_0 = arith.constant 0 : i32
    return %arg0, %arg1, %c0_i32 : i32, i32, i32
  }
  func.func @transform_1(%arg0: i32, %arg1: i32) -> (i32, i32) {
    %c0_i32 = arith.constant 0 : i32
    %c0_i32_0 = arith.constant 0 : i32
    %c0_i32_1 = arith.constant 0 : i32
    return %c0_i32, %c0_i32_0 : i32, i32
  }
  func.func @transform_2(%arg0: i32, %arg1: i32) -> (i32, i32) {
    %c0_i32 = arith.constant 0 : i32
    %c0_i32_0 = arith.constant 0 : i32
    %c0_i32_1 = arith.constant 0 : i32
    return %c0_i32, %c0_i32_0 : i32, i32
  }
  func.func @transform_3(%arg0: i32, %arg1: i32) -> (i32, i32) {
    %c0_i32 = arith.constant 0 : i32
    %c0_i32_0 = arith.constant 0 : i32
    return %arg0, %c0_i32 : i32, i32
  }
}

</mosaic_0001>

<bundles_post_ra>
// kernel: tpu_custom_call.1
= control target key start
LH: loop header
LB: loop body
LE: loop exit
PB: predicated region body
PF: predicated region fallthrough
CT: control target
= control target key end

     0   :  { %s202_s0 = inlined_call_operand.vmem [shape: f32[2,16,32], index: 0, kind: input, shape index: {}]   ;;  %s203_s1 = inlined_call_operand.vmem [shape: f32[32,8], index: 1, kind: input, shape index: {}]   ;;  %s204_s2 = inlined_call_operand.vmem [shape: f32[1,8], index: 2, kind: input, shape index: {}]   ;;  %s205_s3 = inlined_call_operand.hbm [shape: f32[2,8], index: 3, kind: output, shape index: {}]  }
   0x1   :  { %v24_v0 = vld [vmem:[%s203_s1 + $0x10] sm:$0xff]  ;;  %v25_v1 = vld [vmem:[%s203_s1 + $0x18] sm:$0xff]  ;;  %v22_v2 = vld [vmem:[%s203_s1] sm:$0xff] }
   0x2   :  { %v27_v3 = vpack.c.bf16 %v25_v1, %v24_v0  ;;  %v23_v4 = vld [vmem:[%s203_s1 + $0x8] sm:$0xff]  ;;  %v28_v5 = vld [vmem:[%s202_s0] sm:$0xff] }
   0x3   :  { %v29_v6 = vld [vmem:[%s202_s0 + $0x8] sm:$0xff] }
   0x4   :  { %8 = vsyncpa [#allocation4], 0  ;;  %47 = vmatpush.bf16.msra.mxu0 %v27_v3  ;;  %116 = vmatpush.bf16.msra.mxu1 %v27_v3  ;;  %v26_v7 = vpack.c.bf16 %v23_v4, %v22_v2  ;;  %v30_v8 = vld [vmem:[%s202_s0 + $0x10] sm:$0xff]  ;;  %v31_v9 = vld [vmem:[%s202_s0 + $0x18] sm:$0xff]  ;;  %v32_v10 = vpack.c.bf16 %v29_v6, %v28_v5  ;;  %vm34_vm0 = vcmask 261120   ;;  %vm20_vm1 = vcmask 58368  }
   0x5   :  { %v33_v11 = vpack.c.bf16 %v31_v9, %v30_v8  ;;  %v147_v12 = vmov -inf   ;;  %vm61_vm2 = vcmask 64512   ;;  %vm82_vm3 = vcmask 1041409   ;;  %v120_v38 = vld [vmem:[%s204_s2] ss:$0 sm:$0xff]  ;;  %s148_s28 = smov [#allocation3]  }
   0x6   :  { %21 = vst.msk [vmem:[#allocation2] sm:$0x3] %vm20_vm1, %v147_v12  ;;  %s103_s29 = sshll.u32 %s148_s28, 4  ;;  %s105_s5 = sshll.u32 %s205_s3, 4  ;;  %s104_s29 = int_to_ptr.vmem [resolvable:$true] %s103_s29  ;;  %s106_s5 = int_to_ptr.hbm [resolvable:$true] %s105_s5 }
   0x8   :  { %48 = vmatpush.bf16.msra.mxu0 %v26_v7  ;;  %117 = vmatpush.bf16.msra.mxu1 %v26_v7 }
   0xb   :  { %114 = vmatmul.msk.bf16.vlgmr.msra.gmra.mxu0 %vm34_vm0, %v32_v10  ;;  %115 = vmatmul.msk.bf16.vlgmr.msra.gmra.mxu1 %vm34_vm0, %v33_v11 }
   0xd   :  { %v60_v35 = vld [vmem:[#allocation2] sm:$0x3] }
  0x88   :  { %v50_v13 = vpop.f32.mrf.mxu0  ;;  %v55_v14 = vpop.f32.mrf.mxu1 }
  0x89   :  { %v62_v17 = vsel %vm61_vm2, %v50_v13, -inf  ;;  %v71_v18 = vsel %vm61_vm2, %v55_v14, -inf }
  0x90   :  { %v52_v15 = vpop.f32.mrf.mxu0  ;;  %v57_v16 = vpop.f32.mrf.mxu1 }
  0x91   :  { %v63_v19 = vsel %vm61_vm2, %v52_v15, -inf  ;;  %v72_v20 = vsel %vm61_vm2, %v57_v16, -inf }
  0x92   :  { %v64_v21 = vmax.f32 %v62_v17, %v63_v19  ;;  %v73_v22 = vmax.f32 %v71_v18, %v72_v20 }
  0x94   :  { %v65_v23 = vrot.slane %v64_v21, 4  ;;  %v74_v24 = vrot.slane %v73_v22, 4 }
  0x96   :  { %v66_v25 = vmax.f32 %v64_v21, %v65_v23  ;;  %v75_v26 = vmax.f32 %v73_v22, %v74_v24 }
  0x98   :  { %v67_v27 = vrot.slane %v66_v25, 2  ;;  %v76_v28 = vrot.slane %v75_v26, 2 }
  0x9a   :  { %v68_v29 = vmax.f32 %v66_v25, %v67_v27  ;;  %v77_v30 = vmax.f32 %v75_v26, %v76_v28 }
  0x9c   :  { %v69_v31 = vrot.slane %v68_v29, 1  ;;  %v78_v32 = vrot.slane %v77_v30, 1 }
  0x9e   :  { %v70_v33 = vmax.f32 %v68_v29, %v69_v31  ;;  %v79_v34 = vmax.f32 %v77_v30, %v78_v32 }
  0xa0   :  { %v83_v36 = vsel %vm82_vm3, %v79_v34, %v70_v33 }
  0xa1   :  { %v85_v37 = vmax.f32 %v60_v35, %v83_v36 }
  0xa3   :  { %87 = vst.msk [vmem:[#allocation2] sm:$0x3] %vm20_vm1, %v85_v37 }
  0xaa   :  { %v91_v39 = vld [vmem:[#allocation2] sm:$0x3] }
  0xab   :  { %v96_v40 = vadd.f32 %v120_v38, %v91_v39 }
  0xad   :  { %97 = vst.msk [vmem:[#allocation3] sm:$0x3] %vm20_vm1, %v96_v40 }
  0xae   :  { %108 = dma.vmem_to_hbm [thread:$0]  %s104_s29, 32, %s106_s5, [#allocation4]  }
  0xaf   :  { %145 = dma.done.wait [#allocation4], 32  }
  0xb0   :  { %146 = vsyncadd [#allocation4], 4294967264 }
  0xb1   :  { %113 = vsyncpa [#allocation4], 1 }

</bundles_post_ra>
